<compile_context>
chip_gen: v7x
topology: tpu7x:2x2x1
jax: 0.10.0
libtpu: 0.0.40
codegen_flags: <defaults>
</compile_context>

<pallas_src>
import math
from functools import partial

import jax
import jax.numpy as jnp
from jax.experimental import pallas as pl
from jax.experimental.pallas import tpu as pltpu

DEN = 2        # clamp applied after every DEN-th bottleneck block
CLP = 1.0      # "a" argument of clamp
DR = 1.0       # "dr" argument of clamp
BN_EPS = 1e-5


def _round_up(x, m):
    return ((x + m - 1) // m) * m


def _pick_tiles(M, N):
    """(padded M, row tile, col tile) for the GEMM grid."""
    Mp = _round_up(M, 8)
    if Mp <= 256:
        tm = Mp
    else:
        Mp = _round_up(M, 256)
        tm = 256
    if N % 256 == 0:
        tn = 256
    elif N % 128 == 0:
        tn = 128
    else:
        tn = N
    return Mp, tm, tn


# --------------------- GEMM + BN (+ReLU) (+fused residual) ------------------

def _gemm_bn_kernel(a_ref, w_ref, s_ref, b_ref, o_ref, *, relu):
    # bf16 x bf16 on the MXU, f32 accumulate, f32 epilogue, bf16 (or f32) store.
    acc = jnp.dot(a_ref[...], w_ref[...], preferred_element_type=jnp.float32)
    out = acc * s_ref[...] + b_ref[...]
    if relu:
        out = jnp.maximum(out, 0.0)
    o_ref[...] = out.astype(o_ref.dtype)


def _gemm_bn_res_kernel(a_ref, w_ref, s_ref, b_ref, r_ref, o_ref):
    acc = jnp.dot(a_ref[...], w_ref[...], preferred_element_type=jnp.float32)
    out = acc * s_ref[...] + b_ref[...] + r_ref[...].astype(jnp.float32)
    o_ref[...] = jnp.maximum(out, 0.0).astype(o_ref.dtype)


@partial(jax.jit, static_argnames=("relu", "out_dtype"))
def matmul_scale_bias(a, w_bf16, scale, bias, relu, residual=None,
                      out_dtype=jnp.bfloat16):
    """act((a @ w) * scale + bias [+ residual]).
    a:(M,K) float/bf16, w_bf16:(K,N) bf16, scale/bias:(N,), residual:(M,N) or None."""
    M, K = a.shape
    Kw, N = w_bf16.shape
    assert K == Kw
    Mp, tm, tn = _pick_tiles(M, N)

    a_b = a.astype(jnp.bfloat16)
    if Mp != M:
        a_b = jnp.pad(a_b, ((0, Mp - M), (0, 0)))
    s2 = scale.reshape(1, N).astype(jnp.float32)
    b2 = bias.reshape(1, N).astype(jnp.float32)

    in_specs = [
        pl.BlockSpec((tm, K), lambda i, j: (i, 0)),
        pl.BlockSpec((K, tn), lambda i, j: (0, j)),
        pl.BlockSpec((1, tn), lambda i, j: (0, j)),
        pl.BlockSpec((1, tn), lambda i, j: (0, j)),
    ]
    args = [a_b, w_bf16, s2, b2]
    if residual is None:
        kernel = partial(_gemm_bn_kernel, relu=relu)
    else:
        r_b = residual.astype(jnp.bfloat16)
        if Mp != M:
            r_b = jnp.pad(r_b, ((0, Mp - M), (0, 0)))
        in_specs.append(pl.BlockSpec((tm, tn), lambda i, j: (i, j)))
        args.append(r_b)
        kernel = _gemm_bn_res_kernel  # always ReLU (bottleneck output path)

    out = pl.pallas_call(
        kernel,
        out_shape=jax.ShapeDtypeStruct((Mp, N), out_dtype),
        grid=(Mp // tm, N // tn),
        in_specs=in_specs,
        out_specs=pl.BlockSpec((tm, tn), lambda i, j: (i, j)),
        compiler_params=pltpu.CompilerParams(
            dimension_semantics=("parallel", "parallel")),
    )(*args)
    return out if Mp == M else out[:M]


# --------------- stride-1 3x3 conv: in-VMEM 9-tap accumulation ----------------

def _conv3x3_s1_kernel(x_ref, w_ref, s_ref, b_ref, o_ref, *, Wrow, Q, Cin, relu):
    # x_ref: (1, Lp, Cin) flattened zero-padded image (row pitch Wrow = W + 2), bf16.
    # For tap (di, dj) the input row of output flat-index q is q + di*Wrow + dj,
    # so each tap is a contiguous (Q, Cin) window -> 9 accumulated MXU dots.
    acc = None
    for t in range(9):
        di, dj = divmod(t, 3)
        off = di * Wrow + dj
        a = x_ref[0, off:off + Q, :]                       # (Q, Cin) bf16
        wt = w_ref[t * Cin:(t + 1) * Cin, :]               # (Cin, tn) bf16
        d = jnp.dot(a, wt, preferred_element_type=jnp.float32)
        acc = d if acc is None else acc + d
    out = acc * s_ref[...] + b_ref[...]
    if relu:
        out = jnp.maximum(out, 0.0)
    o_ref[0] = out.astype(o_ref.dtype)


def conv3x3_s1_bn_act(x, w, scale, bias, relu):
    """3x3 stride-1 pad-1 conv + BN (+ReLU) without staging im2col in HBM."""
    N, H, W, Cin = x.shape
    K, Cout = w.shape
    assert K == 9 * Cin
    Wrow = W + 2
    Q = H * Wrow                       # outputs produced in padded-flat layout
    L = (H + 2) * Wrow
    Lp = _round_up(Q + 2 * Wrow + 2, 8)  # last tap of last row must stay in bounds
    xp = jnp.pad(x.astype(jnp.bfloat16), ((0, 0), (1, 1), (1, 1), (0, 0)))
    xf = xp.reshape(N, L, Cin)
    if Lp > L:
        xf = jnp.pad(xf, ((0, 0), (0, Lp - L), (0, 0)))
    tn = 128 if Cout % 128 == 0 else Cout
    s2 = scale.reshape(1, Cout).astype(jnp.float32)
    b2 = bias.reshape(1, Cout).astype(jnp.float32)
    out = pl.pallas_call(
        partial(_conv3x3_s1_kernel, Wrow=Wrow, Q=Q, Cin=Cin, relu=relu),
        out_shape=jax.ShapeDtypeStruct((N, Q, Cout), jnp.bfloat16),
        grid=(N, Cout // tn),
        in_specs=[
            pl.BlockSpec((1, Lp, Cin), lambda n, j: (n, 0, 0)),
            pl.BlockSpec((K, tn), lambda n, j: (0, j)),
            pl.BlockSpec((1, tn), lambda n, j: (0, j)),
            pl.BlockSpec((1, tn), lambda n, j: (0, j)),
        ],
        out_specs=pl.BlockSpec((1, Q, tn), lambda n, j: (n, 0, j)),
        compiler_params=pltpu.CompilerParams(
            dimension_semantics=("parallel", "parallel")),
    )(xf, w, s2, b2)
    # drop the 2 padding columns interleaved in the padded-flat output layout
    return out.reshape(N, H, Wrow, Cout)[:, :, :W, :]


# --------------------- conv (NHWC) = (optional im2col) + GEMM ---------------

@partial(jax.jit, static_argnames=("kh", "kw", "stride", "padding", "relu"))
def conv2d_bn_act(x, w, scale, bias, *, kh, kw, stride, padding, relu,
                  residual=None):
    """x NHWC, w:(kh*kw*Cin, Cout) bf16 with (kh,kw,cin) column order.
    Conv2d (no bias) + folded eval-mode BN (+ ReLU) (+ fused residual add)."""
    N, H, W, Cin = x.shape
    K, Cout = w.shape
    Ho = (H + 2 * padding - kh) // stride + 1
    Wo = (W + 2 * padding - kw) // stride + 1
    if kh == 3 and kw == 3 and stride == 1 and padding == 1 and residual is None:
        return conv3x3_s1_bn_act(x, w, scale, bias, relu)
    xb = x.astype(jnp.bfloat16)
    if kh == 1 and kw == 1:
        if stride > 1:
            xb = xb[:, ::stride, ::stride, :]
        a = xb.reshape(N * Ho * Wo, Cin)
    else:
        xp = jnp.pad(xb, ((0, 0), (padding, padding), (padding, padding), (0, 0)))
        pats = [xp[:, i:i + stride * Ho:stride, j:j + stride * Wo:stride, :]
                for i in range(kh) for j in range(kw)]
        a = jnp.stack(pats, axis=3).reshape(N * Ho * Wo, kh * kw * Cin)
    res = None if residual is None else residual.reshape(N * Ho * Wo, Cout)
    out = matmul_scale_bias(a, w, scale, bias, relu=relu, residual=res)
    return out.reshape(N, Ho, Wo, Cout)


# ------------------------------- maxpool -------------------------------------

def _maxpool_kernel(ee_ref, eo_ref, oe_ref, oo_ref, o_ref, *, Ho, Wo):
    ee = ee_ref[0]
    eo = eo_ref[0]
    oe = oe_ref[0]
    oo = oo_ref[0]
    m = jnp.maximum(ee[:Ho, :Wo], ee[:Ho, 1:Wo + 1])
    m = jnp.maximum(m, ee[1:Ho + 1, :Wo])
    m = jnp.maximum(m, ee[1:Ho + 1, 1:Wo + 1])
    m = jnp.maximum(m, eo[:Ho, :Wo])
    m = jnp.maximum(m, eo[1:Ho + 1, :Wo])
    m = jnp.maximum(m, oe[:Ho, :Wo])
    m = jnp.maximum(m, oe[:Ho, 1:Wo + 1])
    m = jnp.maximum(m, oo[:Ho, :Wo])
    o_ref[0] = m


@jax.jit
def maxpool_3x3_s2_p1(x):
    """MaxPool2d(kernel=3, stride=2, padding=1) on NHWC (even H, W), bf16 in/out."""
    N, H, W, C = x.shape
    assert H % 2 == 0 and W % 2 == 0
    Ho, Wo = H // 2, W // 2
    pad_val = float(jnp.finfo(x.dtype).min)
    xp = jnp.pad(x, ((0, 0), (1, 1), (1, 1), (0, 0)), constant_values=pad_val)
    # Four phase-decimated views (~1x tensor staged, vs 9x with full im2col).
    ee = xp[:, 0::2, 0::2, :]
    eo = xp[:, 0::2, 1::2, :]
    oe = xp[:, 1::2, 0::2, :]
    oo = xp[:, 1::2, 1::2, :]
    in_spec = pl.BlockSpec((1, Ho + 1, Wo + 1, C), lambda n: (n, 0, 0, 0))
    return pl.pallas_call(
        partial(_maxpool_kernel, Ho=Ho, Wo=Wo),
        out_shape=jax.ShapeDtypeStruct((N, Ho, Wo, C), x.dtype),
        grid=(N,),
        in_specs=[in_spec, in_spec, in_spec, in_spec],
        out_specs=pl.BlockSpec((1, Ho, Wo, C), lambda n: (n, 0, 0, 0)),
        compiler_params=pltpu.CompilerParams(dimension_semantics=("parallel",)),
    )(ee, eo, oe, oo)


# ---------------------------- global avg pool --------------------------------

def _global_avgpool_kernel(x_ref, o_ref, *, inv_hw):
    s = jnp.sum(x_ref[...].astype(jnp.float32), axis=1) * inv_hw
    o_ref[...] = s.astype(o_ref.dtype)


@jax.jit
def global_avgpool(x):
    """AdaptiveAvgPool2d((1,1)) + flatten on NHWC: (N,H,W,C) -> (N,C)."""
    N, H, W, C = x.shape
    xt = x.reshape(N, H * W, C)
    return pl.pallas_call(
        partial(_global_avgpool_kernel, inv_hw=1.0 / float(H * W)),
        out_shape=jax.ShapeDtypeStruct((N, C), jnp.bfloat16),
    )(xt)


# --------------------------------- clamp -------------------------------------

def _clamp_sum_kernel(x_ref, sum_ref):
    # Accumulate sum of per-pixel channel norms over the spatial ("arbitrary") axis.
    @pl.when(pl.program_id(1) == 0)
    def _():
        sum_ref[...] = jnp.zeros_like(sum_ref)
    x = x_ref[0].astype(jnp.float32)                            # (thw, C)
    norm = jnp.sqrt(jnp.sum(x * x, axis=-1, keepdims=True))     # (thw, 1)
    sum_ref[...] = sum_ref[...] + jnp.sum(norm)


def _clamp_apply_kernel(x_ref, sum_ref, o_ref, *, hw_real, a, dr):
    x = x_ref[0].astype(jnp.float32)                            # (thw, C)
    norm = jnp.sqrt(jnp.sum(x * x, axis=-1, keepdims=True))     # (thw, 1)
    thre = sum_ref[...].reshape(1, 1) * (a / hw_real)           # (1, 1)
    x_unit = x * pl.reciprocal(jnp.maximum(norm, 1e-7), approx=True)
    d = norm - thre
    ratio = d / jnp.maximum(thre, 1e-12)                        # exact divide in exp arg
    normd = thre * jnp.exp((-math.log(dr)) * ratio * ratio)
    new_norm = jnp.where(norm > thre, normd, norm)              # torch semantics
    o_ref[0] = (x_unit * new_norm).astype(o_ref.dtype)


@partial(jax.jit, static_argnames=("a", "dr"))
def clamp(x, a=1.0, dr=1.0):
    """ResNet50.clamp on NHWC: cap per-pixel channel-norms above the spatial mean.
    Two passes (stats + apply), tiled over spatial -> resolution-independent VMEM."""
    N, H, W, C = x.shape
    hw = H * W
    if hw >= 512:
        thw = 512
        hwp = _round_up(hw, thw)
    else:
        hwp = _round_up(hw, 8)
        thw = hwp
    xt = x.reshape(N, hw, C)
    if hwp != hw:
        xt = jnp.pad(xt, ((0, 0), (0, hwp - hw), (0, 0)))
    T = hwp // thw
    sums = pl.pallas_call(
        _clamp_sum_kernel,
        out_shape=jax.ShapeDtypeStruct((N, 1, 1), jnp.float32),
        grid=(N, T),
        in_specs=[pl.BlockSpec((1, thw, C), lambda n, j: (n, j, 0))],
        out_specs=pl.BlockSpec((1, 1, 1), lambda n, j: (n, 0, 0)),
        compiler_params=pltpu.CompilerParams(
            dimension_semantics=("parallel", "arbitrary")),
    )(xt)
    out = pl.pallas_call(
        partial(_clamp_apply_kernel, hw_real=float(hw), a=float(a), dr=float(dr)),
        out_shape=jax.ShapeDtypeStruct((N, hwp, C), x.dtype),
        grid=(N, T),
        in_specs=[pl.BlockSpec((1, thw, C), lambda n, j: (n, j, 0)),
                  pl.BlockSpec((1, 1, 1), lambda n, j: (n, 0, 0))],
        out_specs=pl.BlockSpec((1, thw, C), lambda n, j: (n, j, 0)),
        compiler_params=pltpu.CompilerParams(
            dimension_semantics=("parallel", "parallel")),
    )(xt, sums)
    if hwp != hw:
        out = out[:, :hw, :]
    return out.reshape(N, H, W, C)


# ------------------------------ parameters -----------------------------------

def make_params(key):
    keys = iter(jax.random.split(key, 256))

    def conv_mat(cin, kh, kw, cout):
        fan_in = cin * kh * kw
        w = jax.random.normal(next(keys), (cout, cin, kh, kw),
                              jnp.float32) * (1.0 / math.sqrt(fan_in))
        # (Cout,Cin,kh,kw) -> (kh,kw,Cin,Cout) -> (kh*kw*Cin, Cout), bf16, once.
        return w.transpose(2, 3, 1, 0).reshape(kh * kw * cin, cout).astype(jnp.bfloat16)

    def bn(c):
        k1, k2, k3, k4 = jax.random.split(next(keys), 4)
        gamma = jax.random.uniform(k1, (c,), jnp.float32, 0.5, 1.5)
        beta = jax.random.normal(k2, (c,), jnp.float32) * 0.1
        mean = jax.random.normal(k3, (c,), jnp.float32) * 0.1
        var = jax.random.uniform(k4, (c,), jnp.float32, 0.5, 1.5)
        scale = gamma / jnp.sqrt(var + BN_EPS)
        bias = beta - mean * scale
        return scale, bias

    P = {"conv1_w": conv_mat(3, 7, 7, 64)}
    P["bn1_s"], P["bn1_b"] = bn(64)
    in_ch = 64
    for name, planes, nblocks, stride in (("layer1", 64, 3, 1),
                                          ("layer2", 128, 4, 2),
                                          ("layer3", 256, 6, 2),
                                          ("layer4", 512, 3, 2)):
        blocks = []
        for bi in range(nblocks):
            s = stride if bi == 0 else 1
            bp = {"stride": s}
            bp["conv1_w"] = conv_mat(in_ch, 1, 1, planes)
            bp["bn1_s"], bp["bn1_b"] = bn(planes)
            bp["conv2_w"] = conv_mat(planes, 3, 3, planes)
            bp["bn2_s"], bp["bn2_b"] = bn(planes)
            bp["conv3_w"] = conv_mat(planes, 1, 1, planes * 4)
            bp["bn3_s"], bp["bn3_b"] = bn(planes * 4)
            if s != 1 or in_ch != planes * 4:
                bp["down_w"] = conv_mat(in_ch, 1, 1, planes * 4)
                bp["dbn_s"], bp["dbn_b"] = bn(planes * 4)
            blocks.append(bp)
            in_ch = planes * 4
        P[name] = blocks
    fc_w = jax.random.normal(next(keys), (1000, 2048),
                             jnp.float32) * (1.0 / math.sqrt(2048.0))
    fc_b = jax.random.normal(next(keys), (1000,), jnp.float32) * 0.01
    # Pre-pad output channels 1000 -> 1024 for lane-dense GEMM stores.
    P["fc_w"] = jnp.pad(fc_w.T, ((0, 0), (0, 24))).astype(jnp.bfloat16)   # (2048,1024)
    P["fc_b"] = jnp.pad(fc_b, (0, 24))
    P["fc_ones"] = jnp.ones((1024,), jnp.float32)
    return P


# ------------------------------- model ---------------------------------------

def bottleneck_forward(x, p):
    s = p["stride"]
    out = conv2d_bn_act(x, p["conv1_w"], p["bn1_s"], p["bn1_b"],
                        kh=1, kw=1, stride=1, padding=0, relu=True)
    out = conv2d_bn_act(out, p["conv2_w"], p["bn2_s"], p["bn2_b"],
                        kh=3, kw=3, stride=s, padding=1, relu=True)
    if "down_w" in p:
        identity = conv2d_bn_act(x, p["down_w"], p["dbn_s"], p["dbn_b"],
                                 kh=1, kw=1, stride=s, padding=0, relu=False)
    else:
        identity = x
    # conv3 + BN + residual add + ReLU fused in one GEMM epilogue.
    return conv2d_bn_act(out, p["conv3_w"], p["bn3_s"], p["bn3_b"],
                         kh=1, kw=1, stride=1, padding=0, relu=True,
                         residual=identity)


def resnet50_forward(params, x_nchw):
    x = jnp.transpose(x_nchw, (0, 2, 3, 1))        # NCHW -> NHWC once at the boundary
    # features()
    x = conv2d_bn_act(x, params["conv1_w"], params["bn1_s"], params["bn1_b"],
                      kh=7, kw=7, stride=2, padding=3, relu=True)
    x = maxpool_3x3_s2_p1(x)
    k = 1
    for layer in ("layer1", "layer2", "layer3", "layer4"):
        for bp in params[layer]:
            x = bottleneck_forward(x, bp)
            if k % DEN == 0:
                x = clamp(x, CLP, DR)
            k += 1
    # logits()
    feat = global_avgpool(x)                                           # (N, 2048) bf16
    logits = matmul_scale_bias(feat, params["fc_w"], params["fc_ones"],
                               params["fc_b"], relu=False,
                               out_dtype=jnp.float32)                  # (N, 1024) f32
    return logits[:, :1000]


if __name__ == "__main__":
    key = jax.random.PRNGKey(0)
    pkey, xkey = jax.random.split(key)
    params = make_params(pkey)
    # Small ImageNet-like input: batch=2, 3 channels, 64x64 spatial (NCHW interface).
    x = jax.random.normal(xkey, (2, 3, 64, 64), jnp.float32)
    logits = resnet50_forward(params, x)
    logits = jax.block_until_ready(logits)
    assert logits.shape == (2, 1000)
    assert bool(jnp.all(jnp.isfinite(logits)))
    print("KERNEL_OK")
</pallas_src>

<mosaic_0001>
module attributes {stable_mosaic.version = 11 : i64} {
  func.func @_gemm_bn_kernel(%arg0: i32, %arg1: i32, %arg2: memref<256x147xbf16, #tpu.memory_space<vmem>>, %arg3: memref<147x64xbf16, #tpu.memory_space<vmem>>, %arg4: memref<1x64xf32, #tpu.memory_space<vmem>>, %arg5: memref<1x64xf32, #tpu.memory_space<vmem>>, %arg6: memref<256x64xbf16, #tpu.memory_space<vmem>>) attributes {dimension_semantics = [#tpu.dimension_semantics<parallel>, #tpu.dimension_semantics<parallel>], iteration_bounds = array<i64: 8, 1>, scalar_prefetch = 0 : i64, scratch_operands = 0 : i64, tpu.core_type = #tpu.core_type<tc>, window_params = [{transform_indices = @transform_0, window_bounds = array<i64: 256, 147>}, {transform_indices = @transform_1, window_bounds = array<i64: 147, 64>}, {transform_indices = @transform_2, window_bounds = array<i64: 1, 64>}, {transform_indices = @transform_3, window_bounds = array<i64: 1, 64>}, {transform_indices = @transform_4, window_bounds = array<i64: 256, 64>}]} {
    %c0 = arith.constant 0 : index
    %c0_0 = arith.constant 0 : index
    %0 = vector.load %arg2[%c0, %c0_0] : memref<256x147xbf16, #tpu.memory_space<vmem>>, vector<256x147xbf16>
    %c0_1 = arith.constant 0 : index
    %c0_2 = arith.constant 0 : index
    %1 = vector.load %arg3[%c0_1, %c0_2] : memref<147x64xbf16, #tpu.memory_space<vmem>>, vector<147x64xbf16>
    %cst = arith.constant dense<0.000000e+00> : vector<256x64xf32>
    %2 = tpu.matmul %0, %1, %cst {dimension_numbers = #tpu.dot_dimension_numbers<[1], [0], [0], [1], [0, 0, 1, 1], [], []>} : vector<256x147xbf16>, vector<147x64xbf16>, vector<256x64xf32> -> vector<256x64xf32>
    %c0_3 = arith.constant 0 : index
    %c0_4 = arith.constant 0 : index
    %3 = vector.load %arg4[%c0_3, %c0_4] : memref<1x64xf32, #tpu.memory_space<vmem>>, vector<1x64xf32>
    %4 = vector.broadcast %3 : vector<1x64xf32> to vector<256x64xf32>
    %5 = arith.mulf %2, %4 : vector<256x64xf32>
    %c0_5 = arith.constant 0 : index
    %c0_6 = arith.constant 0 : index
    %6 = vector.load %arg5[%c0_5, %c0_6] : memref<1x64xf32, #tpu.memory_space<vmem>>, vector<1x64xf32>
    %7 = vector.broadcast %6 : vector<1x64xf32> to vector<256x64xf32>
    %8 = arith.addf %5, %7 : vector<256x64xf32>
    %cst_7 = arith.constant 0.000000e+00 : f32
    %9 = vector.broadcast %cst_7 : f32 to vector<256x64xf32>
    %10 = arith.maximumf %8, %9 : vector<256x64xf32>
    %11 = arith.truncf %10 : vector<256x64xf32> to vector<256x64xbf16>
    %c0_8 = arith.constant 0 : index
    %c0_9 = arith.constant 0 : index
    %12 = vector.load %arg6[%c0_8, %c0_9] : memref<256x64xbf16, #tpu.memory_space<vmem>>, vector<256x64xbf16>
    tpu.vector_store %arg6[%c0_8, %c0_9], %11 {strides = array<i32>} : memref<256x64xbf16, #tpu.memory_space<vmem>>, vector<256x64xbf16>,
    return
  }
  func.func @transform_0(%arg0: i32, %arg1: i32) -> (i32, i32) {
    %c0_i32 = arith.constant 0 : i32
    %c0_i32_0 = arith.constant 0 : i32
    return %arg0, %c0_i32 : i32, i32
  }
  func.func @transform_1(%arg0: i32, %arg1: i32) -> (i32, i32) {
    %c0_i32 = arith.constant 0 : i32
    %c0_i32_0 = arith.constant 0 : i32
    return %c0_i32, %arg1 : i32, i32
  }
  func.func @transform_2(%arg0: i32, %arg1: i32) -> (i32, i32) {
    %c0_i32 = arith.constant 0 : i32
    %c0_i32_0 = arith.constant 0 : i32
    return %c0_i32, %arg1 : i32, i32
  }
  func.func @transform_3(%arg0: i32, %arg1: i32) -> (i32, i32) {
    %c0_i32 = arith.constant 0 : i32
    %c0_i32_0 = arith.constant 0 : i32
    return %c0_i32, %arg1 : i32, i32
  }
  func.func @transform_4(%arg0: i32, %arg1: i32) -> (i32, i32) {
    %c0_i32 = arith.constant 0 : i32
    return %arg0, %arg1 : i32, i32
  }
}

</mosaic_0001>

<bundles_post_ra>
// kernel: matmul_scale_bias.1
= control target key start
LH: loop header
LB: loop body
LE: loop exit
PB: predicated region body
PF: predicated region fallthrough
CT: control target
= control target key end

     0   :  { %s1419_s15 = smov 0   ;;  %s1421_s16 = smov 0   ;;  %s1676_s0 = inlined_call_operand.vmem [shape: bf16[2048,147], index: 0, kind: input, shape index: {}]   ;;  %s1677_s1 = inlined_call_operand.vmem [shape: bf16[147,64], index: 1, kind: input, shape index: {}]   ;;  %s1678_s2 = inlined_call_operand.vmem [shape: f32[1,64], index: 2, kind: input, shape index: {}]   ;;  %s1679_s3 = inlined_call_operand.vmem [shape: f32[1,64], index: 3, kind: input, shape index: {}]   ;;  %s1680_s4 = inlined_call_operand.vmem [shape: bf16[2048,64], index: 4, kind: output, shape index: {}]  }
   0x1   :  { %s1423_s17 = smov 0  }
   0x2 LB: > { %s26_s18 = sadd.s32 1, %s1386_s16  ;;  %p1131_p0 = scmp.ge.s32.totalorder %s1390_s17, 1  ;;  %s1390_s17 = sphi %s1423_s17, %s14_s17   ;;  %s1386_s16 = sphi %s1421_s16, %s1682_s16   ;;  %s1382_s15 = sphi %s1419_s15, %s1681_s15  }
   0x3   : > { %p28_p1 = scmp.ge.s32.totalorder %s26_s18, 8  ;;  %p203_p2 = scmp.lt.s32.totalorder %s1390_s17, 9 }
   0x5   : > { %s1684_s18 = smov (%p28_p1, %s26_s18), 0  ;;  %p204_p3 = pnand %p1131_p0, %p203_p2 }
   0x6   : > { %v1310_v0 = vld [vmem:[%s1677_s1] sm:$0xff] (!%p204_p3)   ;;  %v1392_v1 = vmov (!%p204_p3), 0   ;;  %v1311_v2 = vld [vmem:[%s1677_s1 + $0x8] sm:$0xff] (!%p204_p3)   ;;  %v1312_v3 = vld [vmem:[%s1677_s1 + $0x10] sm:$0xff] (!%p204_p3)   ;;  %s1132_s25 = sshll.u32 (!%p204_p3), %s1382_s15, 5  ;;  %vm522_vm0 = vcmask (!%p204_p3), 154624  }
   0x7   : > { %207 = sbr.rel (%p204_p3) target bundleno = 326 (0x146), region = 36  ;;  %578 = vmatprep.subr.bf16.mxu0 (!%p204_p3), %v1392_v1  ;;  %1264 = vmatprep.subr.bf16.mxu1 (!%p204_p3), %v1392_v1  ;;  %p244_p4 = scmp.lt.s32.totalorder (!%p204_p3), %s1132_s25, 255  ;;  %v1313_v4 = vld [vmem:[%s1677_s1 + $0x18] sm:$0xff] (!%p204_p3)   ;;  %v1314_v5 = vld [vmem:[%s1677_s1 + $0x20] sm:$0xff] (!%p204_p3)   ;;  %v1315_v8 = vld [vmem:[%s1677_s1 + $0x28] sm:$0xff] (!%p204_p3)   ;;  %vm571_vm1 = vcmask (!%p204_p3), 1040384  }
   0x8   : > { %579 = vmatpush1.bf16.msra.mxu0 (!%p204_p3), %v1310_v0  ;;  %1274 = vmatpush1.bf16.msra.mxu1 (!%p204_p3), %v1310_v0  ;;  %v1316_v9 = vld [vmem:[%s1677_s1 + $0x30] sm:$0xff] (!%p204_p3)   ;;  %v1317_v10 = vld [vmem:[%s1677_s1 + $0x38] sm:$0xff] (!%p204_p3)   ;;  %vm572_vm2 = vcmask (!%p204_p3), 1041408   ;;  %v1393_v11 = vmov (!%p204_p3), 65535   ;;  %v1318_v13 = vld [vmem:[%s1677_s1 + $0x40] sm:$0xff] (!%p204_p3)   ;;  %vm977_vm3 = vcmask (!%p204_p3), 519168  }
   0x9   : > { %580 = vmatprep.subr.bf16.mxu0 (!%p204_p3), %v1392_v1  ;;  %1265 = vmatprep.subr.bf16.mxu1 (!%p204_p3), %v1392_v1  ;;  %v573_v12 = vsel (!%p204_p3), %vm571_vm1, 4294967295, %v1393_v11  ;;  %v1319_v14 = vld [vmem:[%s1677_s1 + $0x48] ss:$0 sps:$4 sm:$0x33] (!%p204_p3)   ;;  %v1526_v47 = vld [vmem:[%s1678_s2] ss:$0 sm:$0xff] (!%p204_p3) }
   0xa   : > { %v574_v15 = vsel (!%p204_p3), %vm572_vm2, %v573_v12, 0  ;;  %v1531_v49 = vld [vmem:[%s1679_s3] ss:$0 sm:$0xff] (!%p204_p3) }
   0xb   : > { %v576_v16 = vand.u32 (!%p204_p3), %v1319_v14, %v574_v15 }
   0xc   : > { %581 = vmatpush1.bf16.msra.mxu0 (!%p204_p3), %v1311_v2  ;;  %1275 = vmatpush1.bf16.msra.mxu1 (!%p204_p3), %v1311_v2 }
   0xd   : > { %582 = vmatprep.subr.bf16.mxu0 (!%p204_p3), %v1392_v1  ;;  %1266 = vmatprep.subr.bf16.mxu1 (!%p204_p3), %v1392_v1 }
   0xe   : > { %s1686_s25 = smov (!%p244_p4, %s1132_s25), 255 }
   0xf   : > { %s1231_s28 = sshll.u32 %s1686_s25, 3  ;;  %s1136_s26 = sshll.u32 %s1686_s25, 2 }
  0x10   : > { %583 = vmatpush1.bf16.msra.mxu0 %v1312_v3  ;;  %1276 = vmatpush1.bf16.msra.mxu1 %v1312_v3  ;;  %s1455_s5 = scalar_lea.vmem %s1676_s0, %s1231_s28  ;;  %s1545_s25 = scalar_lea.vmem %s1680_s4, %s1136_s26 }
  0x11   : > { %584 = vmatprep.subr.bf16.mxu0 %v1392_v1  ;;  %1267 = vmatprep.subr.bf16.mxu1 %v1392_v1  ;;  %v1322_v6 = vld [vmem:[%s1455_s5 + $0x4] ss:$8 sps:$4 sm:$0xff]   ;;  %v1320_v17 = vld [vmem:[%s1455_s5] ss:$8 sps:$4 sm:$0xff]   ;;  %v1326_v19 = vld [vmem:[%s1455_s5 + $0x14] ss:$8 sps:$4 sm:$0xff]  }
  0x12   : > { %v1325_v7 = vld [vmem:[%s1455_s5 + $0x84] ss:$8 sps:$4 sm:$0xff]   ;;  %1179 = vmatprep.mubr.msk.bf16.mxu0 %vm522_vm0, %v1322_v6  ;;  %v1323_v18 = vld [vmem:[%s1455_s5 + $0x80] ss:$8 sps:$4 sm:$0xff]   ;;  %v1328_v20 = vld [vmem:[%s1455_s5 + $0x94] ss:$8 sps:$4 sm:$0xff]  }
  0x13   : > { %1187 = vmatprep.mubr.msk.bf16.mxu1 %vm522_vm0, %v1325_v7  ;;  %v1330_v21 = vld [vmem:[%s1455_s5 + $0x10] ss:$8 sps:$4 sm:$0xff]   ;;  %v1332_v23 = vld [vmem:[%s1455_s5 + $0x24] ss:$8 sps:$4 sm:$0xff]   ;;  %v1336_v25 = vld [vmem:[%s1455_s5 + $0x20] ss:$8 sps:$4 sm:$0xff]  }
  0x14   : > { %585 = vmatpush1.bf16.msra.mxu0 %v1313_v4  ;;  %1277 = vmatpush1.bf16.msra.mxu1 %v1313_v4  ;;  %v1331_v22 = vld [vmem:[%s1455_s5 + $0x90] ss:$8 sps:$4 sm:$0xff]   ;;  %v1334_v24 = vld [vmem:[%s1455_s5 + $0xa4] ss:$8 sps:$4 sm:$0xff]   ;;  %v1337_v26 = vld [vmem:[%s1455_s5 + $0xa0] ss:$8 sps:$4 sm:$0xff]  }
  0x15   : > { %586 = vmatprep.subr.bf16.mxu0 %v1392_v1  ;;  %1268 = vmatprep.subr.bf16.mxu1 %v1392_v1  ;;  %v1338_v27 = vld [vmem:[%s1455_s5 + $0x34] ss:$8 sps:$4 sm:$0xff]   ;;  %v1342_v29 = vld [vmem:[%s1455_s5 + $0x30] ss:$8 sps:$4 sm:$0xff]   ;;  %v1344_v31 = vld [vmem:[%s1455_s5 + $0x44] ss:$8 sps:$4 sm:$0xff]  }
  0x16   : > { %v1340_v28 = vld [vmem:[%s1455_s5 + $0xb4] ss:$8 sps:$4 sm:$0xff]   ;;  %v1343_v30 = vld [vmem:[%s1455_s5 + $0xb0] ss:$8 sps:$4 sm:$0xff]   ;;  %v1346_v32 = vld [vmem:[%s1455_s5 + $0xc4] ss:$8 sps:$4 sm:$0xff]  }
  0x17   : > { %v1348_v33 = vld [vmem:[%s1455_s5 + $0x40] ss:$8 sps:$4 sm:$0xff]   ;;  %v1350_v35 = vld [vmem:[%s1455_s5 + $0x54] ss:$8 sps:$4 sm:$0xff]   ;;  %v1354_v37 = vld [vmem:[%s1455_s5 + $0x50] ss:$8 sps:$4 sm:$0xff]  }
  0x18   : > { %587 = vmatpush1.bf16.msra.mxu0 %v1314_v5  ;;  %1278 = vmatpush1.bf16.msra.mxu1 %v1314_v5  ;;  %v1349_v34 = vld [vmem:[%s1455_s5 + $0xc0] ss:$8 sps:$4 sm:$0xff]   ;;  %v1352_v36 = vld [vmem:[%s1455_s5 + $0xd4] ss:$8 sps:$4 sm:$0xff]   ;;  %v1355_v38 = vld [vmem:[%s1455_s5 + $0xd0] ss:$8 sps:$4 sm:$0xff]  }
  0x19   : > { %588 = vmatprep.subr.bf16.mxu0 %v1392_v1  ;;  %1269 = vmatprep.subr.bf16.mxu1 %v1392_v1  ;;  %v1356_v39 = vld [vmem:[%s1455_s5 + $0x64] ss:$8 sps:$4 sm:$0xff]   ;;  %v1360_v41 = vld [vmem:[%s1455_s5 + $0x60] ss:$8 sps:$4 sm:$0xff]   ;;  %v1362_v43 = vld [vmem:[%s1455_s5 + $0x74] ss:$8 sps:$4 sm:$0xff]  }
  0x1a   : > { %v1358_v40 = vld [vmem:[%s1455_s5 + $0xe4] ss:$8 sps:$4 sm:$0xff]   ;;  %v1361_v42 = vld [vmem:[%s1455_s5 + $0xe0] ss:$8 sps:$4 sm:$0xff]   ;;  %v1364_v44 = vld [vmem:[%s1455_s5 + $0xf4] ss:$8 sps:$4 sm:$0xff]  }
  0x1b   : > { %v1366_v45 = vld [vmem:[%s1455_s5 + $0x70] ss:$8 sps:$4 sm:$0xff]  }
  0x1c   : > { %589 = vmatpush1.bf16.msra.mxu0 %v1315_v8  ;;  %1279 = vmatpush1.bf16.msra.mxu1 %v1315_v8  ;;  %v1367_v46 = vld [vmem:[%s1455_s5 + $0xf0] ss:$8 sps:$4 sm:$0xff]  }
  0x1d   : > { %590 = vmatprep.subr.bf16.mxu0 %v1392_v1  ;;  %1270 = vmatprep.subr.bf16.mxu1 %v1392_v1 }
  0x20   : > { %591 = vmatpush1.bf16.msra.mxu0 %v1316_v9  ;;  %1280 = vmatpush1.bf16.msra.mxu1 %v1316_v9 }
  0x21   : > { %592 = vmatprep.subr.bf16.mxu0 %v1392_v1  ;;  %1271 = vmatprep.subr.bf16.mxu1 %v1392_v1 }
  0x24   : > { %593 = vmatpush1.bf16.msra.mxu0 %v1317_v10  ;;  %1281 = vmatpush1.bf16.msra.mxu1 %v1317_v10 }
  0x25   : > { %594 = vmatprep.subr.bf16.mxu0 %v1392_v1  ;;  %1272 = vmatprep.subr.bf16.mxu1 %v1392_v1 }
  0x28   : > { %595 = vmatpush1.bf16.msra.mxu0 %v1318_v13  ;;  %1282 = vmatpush1.bf16.msra.mxu1 %v1318_v13 }
  0x29   : > { %596 = vmatprep.subr.bf16.mxu0 %v1392_v1  ;;  %1273 = vmatprep.subr.bf16.mxu1 %v1392_v1 }
  0x2c   : > { %597 = vmatpush1.bf16.msra.mxu0 %v576_v16  ;;  %1283 = vmatpush1.bf16.msra.mxu1 %v576_v16 }
  0x2f   : > { %611 = vmatmul.mubr.bf16.vlgmr.msra.gmra.mrb[0].mxu0 %v1320_v17  ;;  %675 = vmatmul.mubr.bf16.vlgmr.msra.gmra.mrb[0].mxu1 %v1323_v18 }
  0x30   : > { %1180 = vmatprep.mubr.msk.bf16.mxu0 %vm522_vm0, %v1326_v19  ;;  %1188 = vmatprep.mubr.msk.bf16.mxu1 %vm522_vm0, %v1328_v20 }
  0x37   : > { %619 = vmatmul.mubr.bf16.gmra.mrb[4].mxu0 %v1330_v21  ;;  %683 = vmatmul.mubr.bf16.gmra.mrb[4].mxu1 %v1331_v22 }
  0x38   : > { %1181 = vmatprep.mubr.msk.bf16.mxu0 %vm522_vm0, %v1332_v23  ;;  %1189 = vmatprep.mubr.msk.bf16.mxu1 %vm522_vm0, %v1334_v24 }
  0x3f   : > { %627 = vmatmul.mubr.bf16.gmra.mrb[8].mxu0 %v1336_v25  ;;  %691 = vmatmul.mubr.bf16.gmra.mrb[8].mxu1 %v1337_v26 }
  0x40   : > { %1182 = vmatprep.mubr.msk.bf16.mxu0 %vm522_vm0, %v1338_v27  ;;  %1190 = vmatprep.mubr.msk.bf16.mxu1 %vm522_vm0, %v1340_v28 }
  0x47   : > { %635 = vmatmul.mubr.bf16.gmra.mrb[12].mxu0 %v1342_v29  ;;  %699 = vmatmul.mubr.bf16.gmra.mrb[12].mxu1 %v1343_v30 }
  0x48   : > { %1183 = vmatprep.mubr.msk.bf16.mxu0 %vm522_vm0, %v1344_v31  ;;  %1191 = vmatprep.mubr.msk.bf16.mxu1 %vm522_vm0, %v1346_v32 }
  0x4f   : > { %643 = vmatmul.mubr.bf16.gmra.mrb[16].mxu0 %v1348_v33  ;;  %707 = vmatmul.mubr.bf16.gmra.mrb[16].mxu1 %v1349_v34 }
  0x50   : > { %1184 = vmatprep.mubr.msk.bf16.mxu0 %vm522_vm0, %v1350_v35  ;;  %1192 = vmatprep.mubr.msk.bf16.mxu1 %vm522_vm0, %v1352_v36 }
  0x57   : > { %651 = vmatmul.mubr.bf16.gmra.mrb[20].mxu0 %v1354_v37  ;;  %715 = vmatmul.mubr.bf16.gmra.mrb[20].mxu1 %v1355_v38 }
  0x58   : > { %1185 = vmatprep.mubr.msk.bf16.mxu0 %vm522_vm0, %v1356_v39  ;;  %1193 = vmatprep.mubr.msk.bf16.mxu1 %vm522_vm0, %v1358_v40 }
  0x5f   : > { %659 = vmatmul.mubr.bf16.gmra.mrb[24].mxu0 %v1360_v41  ;;  %723 = vmatmul.mubr.bf16.gmra.mrb[24].mxu1 %v1361_v42 }
  0x60   : > { %1186 = vmatprep.mubr.msk.bf16.mxu0 %vm522_vm0, %v1362_v43  ;;  %1194 = vmatprep.mubr.msk.bf16.mxu1 %vm522_vm0, %v1364_v44 }
  0x67   : > { %667 = vmatmul.mubr.bf16.gmra.mrb[28].mxu0 %v1366_v45  ;;  %731 = vmatmul.mubr.bf16.gmra.mrb[28].mxu1 %v1367_v46 }
 0x102   : > { %v612_v48 = vpop.f32.mrb[0].mxu0  ;;  %v676_v50 = vpop.f32.mrb[0].mxu1 }
 0x103   : > { %v746_v51 = vmul.f32 %v1526_v47, %v612_v48  ;;  %v762_v52 = vmul.f32 %v1526_v47, %v676_v50  ;;  %v614_v53 = vpop.f32.mrb[1].mxu0  ;;  %v678_v54 = vpop.f32.mrb[1].mxu1 }
 0x104   : > { %v615_v55 = vpop.f32.mrb[2].mxu0  ;;  %v679_v56 = vpop.f32.mrb[2].mxu1 }
 0x105   : > { %v785_v57 = vadd.f32 %v1531_v49, %v746_v51  ;;  %v801_v58 = vadd.f32 %v1531_v49, %v762_v52  ;;  %v747_v59 = vmul.f32 %v1526_v47, %v615_v55  ;;  %v763_v60 = vmul.f32 %v1526_v47, %v679_v56  ;;  %v617_v61 = vpop.f32.mrb[3].mxu0  ;;  %v681_v62 = vpop.f32.mrb[3].mxu1 }
 0x107   : > { %v817_v63 = vmax.f32 %v785_v57, 0.0  ;;  %v833_v0 = vmax.f32 %v801_v58, 0.0  ;;  %v786_v1 = vadd.f32 %v1531_v49, %v747_v59  ;;  %v802_v2 = vadd.f32 %v1531_v49, %v763_v60 }
 0x109   : > { %v1232_v3 = vpack.c.bf16 %v817_v63, %v817_v63  ;;  %v1248_v4 = vpack.c.bf16 %v833_v0, %v833_v0  ;;  %v818_v5 = vmax.f32 %v786_v1, 0.0  ;;  %v834_v6 = vmax.f32 %v802_v2, 0.0 }
 0x10a   : > { %v620_v7 = vpop.f32.mrb[4].mxu0  ;;  %v684_v8 = vpop.f32.mrb[4].mxu1 }
 0x10b   : > { %978 = vst.msk [vmem:[%s1545_s25] sm:$0xf] %vm977_vm3, %v1232_v3  ;;  %994 = vst.msk [vmem:[%s1545_s25 + $0x40] sm:$0xf] %vm977_vm3, %v1248_v4  ;;  %v1233_v9 = vpack.c.bf16 %v818_v5, %v818_v5  ;;  %v1249_v10 = vpack.c.bf16 %v834_v6, %v834_v6  ;;  %v748_v11 = vmul.f32 %v1526_v47, %v620_v7  ;;  %v622_v13 = vpop.f32.mrb[5].mxu0  ;;  %v686_v14 = vpop.f32.mrb[5].mxu1 }
 0x10c   : > { %v764_v12 = vmul.f32 %v1526_v47, %v684_v8  ;;  %v623_v15 = vpop.f32.mrb[6].mxu0  ;;  %v687_v16 = vpop.f32.mrb[6].mxu1 }
 0x10d   : > { %979 = vst.msk [vmem:[%s1545_s25 + $0x4] sm:$0xf] %vm977_vm3, %v1233_v9  ;;  %995 = vst.msk [vmem:[%s1545_s25 + $0x44] sm:$0xf] %vm977_vm3, %v1249_v10  ;;  %v787_v17 = vadd.f32 %v1531_v49, %v748_v11  ;;  %v749_v19 = vmul.f32 %v1526_v47, %v623_v15  ;;  %v765_v20 = vmul.f32 %v1526_v47, %v687_v16  ;;  %v625_v21 = vpop.f32.mrb[7].mxu0  ;;  %v689_v22 = vpop.f32.mrb[7].mxu1 }
 0x10e   : > { %v803_v18 = vadd.f32 %v1531_v49, %v764_v12 }
 0x10f   : > { %v819_v23 = vmax.f32 %v787_v17, 0.0  ;;  %v788_v25 = vadd.f32 %v1531_v49, %v749_v19  ;;  %v804_v26 = vadd.f32 %v1531_v49, %v765_v20 }
 0x110   : > { %v835_v24 = vmax.f32 %v803_v18, 0.0 }
 0x111   : > { %v1234_v27 = vpack.c.bf16 %v819_v23, %v819_v23  ;;  %v820_v29 = vmax.f32 %v788_v25, 0.0  ;;  %v836_v30 = vmax.f32 %v804_v26, 0.0 }
 0x112   : > { %v1250_v28 = vpack.c.bf16 %v835_v24, %v835_v24  ;;  %v628_v31 = vpop.f32.mrb[8].mxu0  ;;  %v692_v32 = vpop.f32.mrb[8].mxu1 }
 0x113   : > { %980 = vst.msk [vmem:[%s1545_s25 + $0x8] sm:$0xf] %vm977_vm3, %v1234_v27  ;;  %v1235_v33 = vpack.c.bf16 %v820_v29, %v820_v29  ;;  %v1251_v34 = vpack.c.bf16 %v836_v30, %v836_v30  ;;  %v750_v35 = vmul.f32 %v1526_v47, %v628_v31  ;;  %v766_v36 = vmul.f32 %v1526_v47, %v692_v32  ;;  %v630_v37 = vpop.f32.mrb[9].mxu0  ;;  %v694_v38 = vpop.f32.mrb[9].mxu1 }
 0x114   : > { %996 = vst.msk [vmem:[%s1545_s25 + $0x48] sm:$0xf] %vm977_vm3, %v1250_v28  ;;  %v631_v39 = vpop.f32.mrb[10].mxu0  ;;  %v695_v40 = vpop.f32.mrb[10].mxu1 }
 0x115   : > { %981 = vst.msk [vmem:[%s1545_s25 + $0xc] sm:$0xf] %vm977_vm3, %v1235_v33  ;;  %997 = vst.msk [vmem:[%s1545_s25 + $0x4c] sm:$0xf] %vm977_vm3, %v1251_v34  ;;  %v789_v41 = vadd.f32 %v1531_v49, %v750_v35  ;;  %v805_v42 = vadd.f32 %v1531_v49, %v766_v36  ;;  %v751_v43 = vmul.f32 %v1526_v47, %v631_v39  ;;  %v633_v45 = vpop.f32.mrb[11].mxu0  ;;  %v697_v46 = vpop.f32.mrb[11].mxu1 }
 0x116   : > { %v767_v44 = vmul.f32 %v1526_v47, %v695_v40 }
 0x117   : > { %v821_v48 = vmax.f32 %v789_v41, 0.0  ;;  %v837_v50 = vmax.f32 %v805_v42, 0.0  ;;  %v790_v51 = vadd.f32 %v1531_v49, %v751_v43 }
 0x118   : > { %v806_v52 = vadd.f32 %v1531_v49, %v767_v44 }
 0x119   : > { %v1236_v53 = vpack.c.bf16 %v821_v48, %v821_v48  ;;  %v1252_v54 = vpack.c.bf16 %v837_v50, %v837_v50  ;;  %v822_v55 = vmax.f32 %v790_v51, 0.0 }
 0x11a   : > { %v838_v56 = vmax.f32 %v806_v52, 0.0  ;;  %v636_v57 = vpop.f32.mrb[12].mxu0  ;;  %v700_v58 = vpop.f32.mrb[12].mxu1 }
 0x11b   : > { %982 = vst.msk [vmem:[%s1545_s25 + $0x10] sm:$0xf] %vm977_vm3, %v1236_v53  ;;  %998 = vst.msk [vmem:[%s1545_s25 + $0x50] sm:$0xf] %vm977_vm3, %v1252_v54  ;;  %v1237_v59 = vpack.c.bf16 %v822_v55, %v822_v55  ;;  %v752_v61 = vmul.f32 %v1526_v47, %v636_v57  ;;  %v768_v62 = vmul.f32 %v1526_v47, %v700_v58  ;;  %v638_v63 = vpop.f32.mrb[13].mxu0  ;;  %v702_v0 = vpop.f32.mrb[13].mxu1 }
 0x11c   : > { %v1253_v60 = vpack.c.bf16 %v838_v56, %v838_v56  ;;  %v639_v1 = vpop.f32.mrb[14].mxu0  ;;  %v703_v2 = vpop.f32.mrb[14].mxu1 }
 0x11d   : > { %983 = vst.msk [vmem:[%s1545_s25 + $0x14] sm:$0xf] %vm977_vm3, %v1237_v59  ;;  %v791_v3 = vadd.f32 %v1531_v49, %v752_v61  ;;  %v807_v4 = vadd.f32 %v1531_v49, %v768_v62  ;;  %v753_v5 = vmul.f32 %v1526_v47, %v639_v1  ;;  %v769_v6 = vmul.f32 %v1526_v47, %v703_v2  ;;  %v641_v7 = vpop.f32.mrb[15].mxu0  ;;  %v705_v8 = vpop.f32.mrb[15].mxu1 }
 0x11e   : > { %999 = vst.msk [vmem:[%s1545_s25 + $0x54] sm:$0xf] %vm977_vm3, %v1253_v60 }
 0x11f   : > { %v823_v9 = vmax.f32 %v791_v3, 0.0  ;;  %v839_v10 = vmax.f32 %v807_v4, 0.0  ;;  %v792_v11 = vadd.f32 %v1531_v49, %v753_v5  ;;  %v808_v12 = vadd.f32 %v1531_v49, %v769_v6 }
 0x121   : > { %v1238_v13 = vpack.c.bf16 %v823_v9, %v823_v9  ;;  %v1254_v14 = vpack.c.bf16 %v839_v10, %v839_v10  ;;  %v824_v15 = vmax.f32 %v792_v11, 0.0  ;;  %v840_v16 = vmax.f32 %v808_v12, 0.0 }
 0x122   : > { %v644_v17 = vpop.f32.mrb[16].mxu0  ;;  %v708_v18 = vpop.f32.mrb[16].mxu1 }
 0x123   : > { %984 = vst.msk [vmem:[%s1545_s25 + $0x18] sm:$0xf] %vm977_vm3, %v1238_v13  ;;  %1000 = vst.msk [vmem:[%s1545_s25 + $0x58] sm:$0xf] %vm977_vm3, %v1254_v14  ;;  %v1239_v19 = vpack.c.bf16 %v824_v15, %v824_v15  ;;  %v1255_v20 = vpack.c.bf16 %v840_v16, %v840_v16  ;;  %v754_v21 = vmul.f32 %v1526_v47, %v644_v17  ;;  %v646_v23 = vpop.f32.mrb[17].mxu0  ;;  %v710_v24 = vpop.f32.mrb[17].mxu1 }
 0x124   : > { %v770_v22 = vmul.f32 %v1526_v47, %v708_v18  ;;  %v647_v25 = vpop.f32.mrb[18].mxu0  ;;  %v711_v26 = vpop.f32.mrb[18].mxu1 }
 0x125   : > { %985 = vst.msk [vmem:[%s1545_s25 + $0x1c] sm:$0xf] %vm977_vm3, %v1239_v19  ;;  %1001 = vst.msk [vmem:[%s1545_s25 + $0x5c] sm:$0xf] %vm977_vm3, %v1255_v20  ;;  %v793_v27 = vadd.f32 %v1531_v49, %v754_v21  ;;  %v755_v29 = vmul.f32 %v1526_v47, %v647_v25  ;;  %v771_v30 = vmul.f32 %v1526_v47, %v711_v26  ;;  %v649_v31 = vpop.f32.mrb[19].mxu0  ;;  %v713_v32 = vpop.f32.mrb[19].mxu1 }
 0x126   : > { %v809_v28 = vadd.f32 %v1531_v49, %v770_v22 }
 0x127   : > { %v825_v33 = vmax.f32 %v793_v27, 0.0  ;;  %v794_v35 = vadd.f32 %v1531_v49, %v755_v29  ;;  %v810_v36 = vadd.f32 %v1531_v49, %v771_v30 }
 0x128   : > { %v841_v34 = vmax.f32 %v809_v28, 0.0 }
 0x129   : > { %v1240_v37 = vpack.c.bf16 %v825_v33, %v825_v33  ;;  %v826_v39 = vmax.f32 %v794_v35, 0.0  ;;  %v842_v40 = vmax.f32 %v810_v36, 0.0 }
 0x12a   : > { %v1256_v38 = vpack.c.bf16 %v841_v34, %v841_v34  ;;  %v652_v41 = vpop.f32.mrb[20].mxu0  ;;  %v716_v42 = vpop.f32.mrb[20].mxu1 }
 0x12b   : > { %986 = vst.msk [vmem:[%s1545_s25 + $0x20] sm:$0xf] %vm977_vm3, %v1240_v37  ;;  %v1241_v43 = vpack.c.bf16 %v826_v39, %v826_v39  ;;  %v1257_v44 = vpack.c.bf16 %v842_v40, %v842_v40  ;;  %v756_v45 = vmul.f32 %v1526_v47, %v652_v41  ;;  %v772_v46 = vmul.f32 %v1526_v47, %v716_v42  ;;  %v654_v48 = vpop.f32.mrb[21].mxu0  ;;  %v718_v50 = vpop.f32.mrb[21].mxu1 }
 0x12c   : > { %1002 = vst.msk [vmem:[%s1545_s25 + $0x60] sm:$0xf] %vm977_vm3, %v1256_v38  ;;  %v655_v51 = vpop.f32.mrb[22].mxu0  ;;  %v719_v52 = vpop.f32.mrb[22].mxu1 }
 0x12d   : > { %987 = vst.msk [vmem:[%s1545_s25 + $0x24] sm:$0xf] %vm977_vm3, %v1241_v43  ;;  %1003 = vst.msk [vmem:[%s1545_s25 + $0x64] sm:$0xf] %vm977_vm3, %v1257_v44  ;;  %v795_v53 = vadd.f32 %v1531_v49, %v756_v45  ;;  %v811_v54 = vadd.f32 %v1531_v49, %v772_v46  ;;  %v757_v55 = vmul.f32 %v1526_v47, %v655_v51  ;;  %v657_v57 = vpop.f32.mrb[23].mxu0  ;;  %v721_v58 = vpop.f32.mrb[23].mxu1 }
 0x12e   : > { %v773_v56 = vmul.f32 %v1526_v47, %v719_v52 }
 0x12f   : > { %v827_v59 = vmax.f32 %v795_v53, 0.0  ;;  %v843_v60 = vmax.f32 %v811_v54, 0.0  ;;  %v796_v61 = vadd.f32 %v1531_v49, %v757_v55 }
 0x130   : > { %v812_v62 = vadd.f32 %v1531_v49, %v773_v56 }
 0x131   : > { %v1242_v63 = vpack.c.bf16 %v827_v59, %v827_v59  ;;  %v1258_v0 = vpack.c.bf16 %v843_v60, %v843_v60  ;;  %v828_v1 = vmax.f32 %v796_v61, 0.0 }
 0x132   : > { %v844_v2 = vmax.f32 %v812_v62, 0.0  ;;  %v660_v3 = vpop.f32.mrb[24].mxu0  ;;  %v724_v4 = vpop.f32.mrb[24].mxu1 }
 0x133   : > { %988 = vst.msk [vmem:[%s1545_s25 + $0x28] sm:$0xf] %vm977_vm3, %v1242_v63  ;;  %1004 = vst.msk [vmem:[%s1545_s25 + $0x68] sm:$0xf] %vm977_vm3, %v1258_v0  ;;  %v1243_v5 = vpack.c.bf16 %v828_v1, %v828_v1  ;;  %v758_v7 = vmul.f32 %v1526_v47, %v660_v3  ;;  %v774_v8 = vmul.f32 %v1526_v47, %v724_v4  ;;  %v662_v9 = vpop.f32.mrb[25].mxu0  ;;  %v726_v10 = vpop.f32.mrb[25].mxu1 }
 0x134   : > { %v1259_v6 = vpack.c.bf16 %v844_v2, %v844_v2  ;;  %v663_v11 = vpop.f32.mrb[26].mxu0  ;;  %v727_v12 = vpop.f32.mrb[26].mxu1 }
 0x135   : > { %989 = vst.msk [vmem:[%s1545_s25 + $0x2c] sm:$0xf] %vm977_vm3, %v1243_v5  ;;  %v797_v13 = vadd.f32 %v1531_v49, %v758_v7  ;;  %v813_v14 = vadd.f32 %v1531_v49, %v774_v8  ;;  %v759_v15 = vmul.f32 %v1526_v47, %v663_v11  ;;  %v775_v16 = vmul.f32 %v1526_v47, %v727_v12  ;;  %v665_v17 = vpop.f32.mrb[27].mxu0  ;;  %v729_v18 = vpop.f32.mrb[27].mxu1 }
 0x136   : > { %1005 = vst.msk [vmem:[%s1545_s25 + $0x6c] sm:$0xf] %vm977_vm3, %v1259_v6 }
 0x137   : > { %v829_v19 = vmax.f32 %v797_v13, 0.0  ;;  %v845_v20 = vmax.f32 %v813_v14, 0.0  ;;  %v798_v21 = vadd.f32 %v1531_v49, %v759_v15  ;;  %v814_v22 = vadd.f32 %v1531_v49, %v775_v16 }
 0x139   : > { %v1244_v23 = vpack.c.bf16 %v829_v19, %v829_v19  ;;  %v1260_v24 = vpack.c.bf16 %v845_v20, %v845_v20  ;;  %v830_v25 = vmax.f32 %v798_v21, 0.0  ;;  %v846_v26 = vmax.f32 %v814_v22, 0.0 }
 0x13a   : > { %v668_v27 = vpop.f32.mrb[28].mxu0  ;;  %v732_v28 = vpop.f32.mrb[28].mxu1 }
 0x13b   : > { %990 = vst.msk [vmem:[%s1545_s25 + $0x30] sm:$0xf] %vm977_vm3, %v1244_v23  ;;  %1006 = vst.msk [vmem:[%s1545_s25 + $0x70] sm:$0xf] %vm977_vm3, %v1260_v24  ;;  %v1245_v29 = vpack.c.bf16 %v830_v25, %v830_v25  ;;  %v1261_v30 = vpack.c.bf16 %v846_v26, %v846_v26  ;;  %v760_v31 = vmul.f32 %v1526_v47, %v668_v27  ;;  %v670_v33 = vpop.f32.mrb[29].mxu0  ;;  %v734_v34 = vpop.f32.mrb[29].mxu1 }
 0x13c   : > { %v776_v32 = vmul.f32 %v1526_v47, %v732_v28  ;;  %v671_v35 = vpop.f32.mrb[30].mxu0  ;;  %v735_v36 = vpop.f32.mrb[30].mxu1 }
 0x13d   : > { %991 = vst.msk [vmem:[%s1545_s25 + $0x34] sm:$0xf] %vm977_vm3, %v1245_v29  ;;  %1007 = vst.msk [vmem:[%s1545_s25 + $0x74] sm:$0xf] %vm977_vm3, %v1261_v30  ;;  %v799_v37 = vadd.f32 %v1531_v49, %v760_v31  ;;  %v761_v39 = vmul.f32 %v1526_v47, %v671_v35  ;;  %v777_v40 = vmul.f32 %v1526_v47, %v735_v36  ;;  %v673_v41 = vpop.f32.mrb[31].mxu0  ;;  %v737_v42 = vpop.f32.mrb[31].mxu1 }
 0x13e   : > { %v815_v38 = vadd.f32 %v1531_v49, %v776_v32 }
 0x13f   : > { %v831_v43 = vmax.f32 %v799_v37, 0.0  ;;  %v800_v45 = vadd.f32 %v1531_v49, %v761_v39  ;;  %v816_v46 = vadd.f32 %v1531_v49, %v777_v40 }
 0x140   : > { %v847_v44 = vmax.f32 %v815_v38, 0.0 }
 0x141   : > { %v1246_v48 = vpack.c.bf16 %v831_v43, %v831_v43  ;;  %v832_v51 = vmax.f32 %v800_v45, 0.0  ;;  %v848_v52 = vmax.f32 %v816_v46, 0.0 }
 0x142   : > { %v1262_v50 = vpack.c.bf16 %v847_v44, %v847_v44 }
 0x143   : > { %992 = vst.msk [vmem:[%s1545_s25 + $0x38] sm:$0xf] %vm977_vm3, %v1246_v48  ;;  %v1247_v53 = vpack.c.bf16 %v832_v51, %v832_v51  ;;  %v1263_v54 = vpack.c.bf16 %v848_v52, %v848_v52 }
 0x144   : > { %1008 = vst.msk [vmem:[%s1545_s25 + $0x78] sm:$0xf] %vm977_vm3, %v1262_v50 }
 0x145   : > { %993 = vst.msk [vmem:[%s1545_s25 + $0x3c] sm:$0xf] %vm977_vm3, %v1247_v53  ;;  %1009 = vst.msk [vmem:[%s1545_s25 + $0x7c] sm:$0xf] %vm977_vm3, %v1263_v54 }
 0x146 PF: > { %s14_s17 = sadd.s32 1, %s1390_s17   ;;  %s1681_s15 = smov %s1386_s16 }
 0x147   : > { %p11_p5 = scmp.ge.s32.totalorder %s14_s17, 10   ;;  %s1682_s16 = smov %s1684_s18 }
 0x149   :  { %13 = sbr.rel (!%p11_p5) target bundleno = 2 (0x2), region = 75 }

</bundles_post_ra>
